<compile_context>
chip_gen: v5e
topology: v5e:2x2
jax: 0.10.0
libtpu: 0.0.40
codegen_flags: <defaults>
</compile_context>

<pallas_src>
import math

import jax
import jax.numpy as jnp
from jax.experimental import pallas as pl
from jax.experimental.pallas import tpu as pltpu


def _round_up(x, m):
    return ((x + m - 1) // m) * m


def _lanes(n):
    """Lane-padded width of a dimension once it lands in VMEM (128-lane vregs)."""
    return _round_up(max(int(n), 1), 128)


def _default_vmem_budget_bytes():
    """Per-generation VMEM budget for the streamed working set.

    v4/v5e/v5p/v6e have 128 MiB physical VMEM -> 64 MiB is a generous budget
    well above the 16/32 MiB default scoped limits.  v7x has only 64 MiB per
    TensorCore -> stay at 40 MiB; unknown chips get the conservative number.
    """
    try:
        kind = jax.devices()[0].device_kind.lower()
    except Exception:  # pragma: no cover - defensive
        kind = ""
    if ("v4" in kind) or ("v5" in kind) or ("v6" in kind):
        return 64 * 1024 * 1024
    return 40 * 1024 * 1024


def _make_qfunc_kernel(num_layers):
    """Kernel for an MLP Q-function with `num_layers` Linear layers.

    Ref order:
      obs, act,
      w0_obs, w0_act, b0,                 # first layer (concat folded)
      w1, b1, ..., w_{L-2}, b_{L-2},      # middle hidden layers
      w_last_row (1, n), b_last (1, 1),   # width-1 output layer (off-MXU)
      out
    For num_layers == 1 the params are just w0_obs_row, w0_act_row, b0 (1,1).
    Hidden activation is ReLU (the standard choice for this module).
    """

    def kernel(*refs):
        obs_ref, act_ref = refs[0], refs[1]
        out_ref = refs[-1]
        params = refs[2:-1]

        if num_layers == 1:
            # Single width-1 layer: pure VPU multiply + XLU lane reduction.
            w_obs_row = params[0][...]
            w_act_row = params[1][...]
            b0 = params[2][...]
            q = (
                jnp.sum(obs_ref[...].astype(jnp.float32) * w_obs_row,
                        axis=-1, keepdims=True)
                + jnp.sum(act_ref[...].astype(jnp.float32) * w_act_row,
                          axis=-1, keepdims=True)
                + b0
            )
        else:
            # First hidden layer: folded concat -> two MXU dots, f32 accumulate.
            # obs/act and W0 share the streaming dtype (bf16 path = single-pass
            # bf16 MXU issue, f32 accumulation).
            w0_obs = params[0][...]
            w0_act = params[1][...]
            b0 = params[2][...]
            x = (
                jnp.dot(obs_ref[...], w0_obs, preferred_element_type=jnp.float32)
                + jnp.dot(act_ref[...], w0_act, preferred_element_type=jnp.float32)
                + b0
            )
            x = jnp.maximum(x, 0.0)

            # Middle hidden layers on the MXU.  Cast the activation to the
            # (possibly bf16) weight dtype so the MXU stays single-pass.
            for i in range(1, num_layers - 1):
                w = params[3 + 2 * (i - 1)][...]
                b = params[4 + 2 * (i - 1)][...]
                x = jnp.dot(x.astype(w.dtype), w,
                            preferred_element_type=jnp.float32) + b
                x = jnp.maximum(x, 0.0)

            # Output layer (width 1): an N=1 matmul fills 1 of 128/256 MXU
            # columns -> do it on the VPU (multiply) + XLU (lane reduce).
            w_last_row = params[-2][...]   # (1, n_last), f32
            b_last = params[-1][...]       # (1, 1), f32
            q = jnp.sum(x * w_last_row, axis=-1, keepdims=True) + b_last

        out_ref[...] = q.astype(out_ref.dtype)

    return kernel


def mlp_qfunction(obs, act, weights, biases, obs_dim, *,
                  tile_b=8192, input_dtype=None, vmem_budget_bytes=None):
    """Run the fused MLP Q-function Pallas kernel.

    weights: list of (in_dim, out_dim) arrays (transpose of torch nn.Linear
    weight); biases: list of (out_dim,) arrays.  Returns q of shape (batch,).

    input_dtype: optional narrow streaming dtype (e.g. jnp.bfloat16).  Casts
    obs/act AND the hidden-layer weights (biases and the width-1 head stay
    f32; all accumulation is f32).  Opt-in and slightly lossy vs the exact
    float32 forward, in exchange for ~2x less HBM traffic on the batch stream.
    """
    num_layers = len(weights)
    batch = obs.shape[0]
    act_dim = act.shape[1]

    if input_dtype is not None:
        obs = obs.astype(input_dtype)
        act = act.astype(input_dtype)

    # --- parameter packing ---------------------------------------------------
    def hidden_cast(w):
        return w if input_dtype is None else w.astype(input_dtype)

    w0 = weights[0]
    if num_layers == 1:
        params = [w0[:obs_dim, :].T.astype(jnp.float32),
                  w0[obs_dim:, :].T.astype(jnp.float32),
                  biases[0].reshape(1, 1).astype(jnp.float32)]
    else:
        params = [hidden_cast(w0[:obs_dim, :]), hidden_cast(w0[obs_dim:, :]),
                  biases[0].reshape(1, -1).astype(jnp.float32)]
        for w, b in zip(weights[1:-1], biases[1:-1]):
            params += [hidden_cast(w), b.reshape(1, -1).astype(jnp.float32)]
        # Width-1 head stays f32 (runs on the VPU; cost is negligible).
        params += [weights[-1].T.astype(jnp.float32),
                   biases[-1].reshape(1, 1).astype(jnp.float32)]
    param_bytes = sum(int(p.size) * p.dtype.itemsize for p in params)

    # --- batch tiling under an explicit VMEM budget ----------------------------
    budget = (int(vmem_budget_bytes) if vmem_budget_bytes is not None
              else _default_vmem_budget_bytes())

    in_itemsize = jnp.dtype(obs.dtype).itemsize
    sub = max(8, 32 // in_itemsize)          # sublane granularity (f32: 8, bf16: 16)

    # Real (lane-padded) VMEM bytes per batch row:
    #   * obs/act stream blocks: double-buffered, each padded to 128 lanes,
    #   * the (tile_b, 1) f32 output block: double-buffered, padded to 128 lanes,
    #   * per-layer f32 activations (upper bound: all layers live at once).
    row_bytes = 2 * (_lanes(obs_dim) + _lanes(act_dim)) * in_itemsize
    row_bytes += 2 * _lanes(1) * 4
    row_bytes += sum(_lanes(int(w.shape[1])) for w in weights) * 4
    cap_rows = max(sub, int((budget - param_bytes) * 0.85) // row_bytes)

    tile_b = min(int(tile_b), cap_rows, _round_up(batch, sub))
    if batch > sub:
        # Keep at least 2 grid steps so the "parallel" batch axis can shard
        # across both TensorCores on v7x (harmless tiny extra step elsewhere).
        tile_b = min(tile_b, _round_up((batch + 1) // 2, sub))
    tile_b = max(sub, (tile_b // sub) * sub)

    padded = _round_up(batch, tile_b)
    grid = (padded // tile_b,)
    if padded != batch:
        obs = jnp.pad(obs, ((0, padded - batch), (0, 0)))
        act = jnp.pad(act, ((0, padded - batch), (0, 0)))

    args = [obs, act] + params

    # --- BlockSpecs ------------------------------------------------------------
    # obs/act/out stream over the batch grid (auto double-buffered); params use
    # a constant index_map so they are DMA'd once and stay VMEM-resident.
    def stream_spec(cols):
        return pl.BlockSpec((tile_b, cols), lambda i: (i, 0))

    def resident_spec(p):
        # TODO(synk): pipeline_mode=pl.Buffered(1) would drop the (tiny)
        # second buffer of these constant-index blocks once single-buffered
        # resident blocks are reliably supported.
        return pl.BlockSpec(p.shape, lambda i: (0, 0))

    in_specs = ([stream_spec(obs_dim), stream_spec(act_dim)]
                + [resident_spec(p) for p in params])
    out_specs = pl.BlockSpec((tile_b, 1), lambda i: (i, 0))
    # TODO(synk): lane-dense (1, tile_b) output would free ~1 KiB/row of
    # double-buffered VMEM and the masked 1-lane stores, but needs an in-kernel
    # (tile_b, 1) -> (1, tile_b) relayout that Mosaic does not lower reliably;
    # kept column-shaped (same idiom as splash-attention's per-row logsumexp).
    # TODO(synk): biggest structural win left on the table: pack 8 batch rows
    # per sublane (obs -> (batch/8, 8*obs_dim)) with block-diagonal weights so
    # every streamed buffer is fully lane-dense.

    # --- cost hint for the XLA scheduler ----------------------------------------
    layer_flops = 0
    prev = obs_dim + act_dim
    for w in weights:
        layer_flops += 2 * prev * int(w.shape[1])
        prev = int(w.shape[1])
    bytes_in = (int(obs.size) * obs.dtype.itemsize
                + int(act.size) * act.dtype.itemsize)
    cost = pl.CostEstimate(
        flops=int(padded * layer_flops),
        transcendentals=0,
        bytes_accessed=int(bytes_in + param_bytes + padded * 4),
    )

    out = pl.pallas_call(
        _make_qfunc_kernel(num_layers),
        out_shape=jax.ShapeDtypeStruct((padded, 1), jnp.float32),
        grid=grid,
        in_specs=in_specs,
        out_specs=out_specs,
        compiler_params=pltpu.CompilerParams(
            dimension_semantics=("parallel",),
            vmem_limit_bytes=int(budget),
        ),
        cost_estimate=cost,
    )(*args)

    return jnp.squeeze(out[:batch], -1)


def init_params(key, sizes, gain=0.01):
    """Deterministic xavier_normal_ (gain=0.01) weights, zero biases.

    Mirrors _weight_init; sizes: [in0, h0, ..., 1]; weights stored (in_dim, out_dim).
    """
    weights, biases = [], []
    for j in range(len(sizes) - 1):
        fan_in, fan_out = sizes[j], sizes[j + 1]
        std = gain * math.sqrt(2.0 / (fan_in + fan_out))
        key, sub = jax.random.split(key)
        w = std * jax.random.normal(sub, (fan_in, fan_out), dtype=jnp.float32)
        b = jnp.zeros((fan_out,), dtype=jnp.float32)
        weights.append(w)
        biases.append(b)
    return weights, biases


def reference_qfunction(obs, act, weights, biases, cast_dtype=None):
    """Pure-JAX reference matching the PyTorch forward (ReLU hidden layers).

    cast_dtype mirrors the kernel's opt-in narrow-streaming path: obs/act and
    the hidden-layer weights are rounded through cast_dtype, activations are
    re-rounded before each hidden matmul, and the width-1 head stays f32.
    """
    n = len(weights)
    x = jnp.concatenate([obs, act], axis=-1).astype(jnp.float32)
    if cast_dtype is not None:
        x = x.astype(cast_dtype).astype(jnp.float32)
    for i, (w, b) in enumerate(zip(weights, biases)):
        w = w.astype(jnp.float32)
        if cast_dtype is not None and i < n - 1:
            if i > 0:
                x = x.astype(cast_dtype).astype(jnp.float32)
            w = w.astype(cast_dtype).astype(jnp.float32)
        x = x @ w + b
        if i < n - 1:
            x = jnp.maximum(x, 0.0)
    return jnp.squeeze(x, -1)


if __name__ == "__main__":
    # Module hyperparameters (small, consistent with the forward pass).
    obs_dim, act_dim = 16, 8
    hidden_sizes = [32, 32]
    hidden_sizes = list(hidden_sizes)
    hidden_sizes[0] += act_dim                        # as in MLPQFunction.__init__
    sizes = [obs_dim + act_dim] + hidden_sizes + [1]  # [24, 40, 32, 1]

    key = jax.random.PRNGKey(0)
    k_obs, k_act, k_param, k_obs2, k_act2, k_obs3, k_act3 = jax.random.split(key, 7)
    weights, biases = init_params(k_param, sizes)

    # 1) small batch, f32: tile clamps to the batch, single grid step.
    batch = 8
    obs = jax.random.normal(k_obs, (batch, obs_dim), dtype=jnp.float32)
    act = jax.random.normal(k_act, (batch, act_dim), dtype=jnp.float32)
    q = jax.block_until_ready(mlp_qfunction(obs, act, weights, biases, obs_dim))
    q_ref = reference_qfunction(obs, act, weights, biases)
    assert q.shape == (batch,), q.shape
    assert jnp.allclose(q, q_ref, atol=1e-8, rtol=5e-3), (q, q_ref)

    # 2) batch not a multiple of the tile, tiny explicit tile -> 3-step grid + padding.
    batch2 = 20
    obs2 = jax.random.normal(k_obs2, (batch2, obs_dim), dtype=jnp.float32)
    act2 = jax.random.normal(k_act2, (batch2, act_dim), dtype=jnp.float32)
    q2 = jax.block_until_ready(
        mlp_qfunction(obs2, act2, weights, biases, obs_dim, tile_b=8))
    q2_ref = reference_qfunction(obs2, act2, weights, biases)
    assert q2.shape == (batch2,), q2.shape
    assert jnp.allclose(q2, q2_ref, atol=1e-8, rtol=5e-3), (q2, q2_ref)

    # 3) same batch with automatic tiling: splits into >= 2 grid steps + padding.
    q2b = jax.block_until_ready(
        mlp_qfunction(obs2, act2, weights, biases, obs_dim))
    assert jnp.allclose(q2b, q2_ref, atol=1e-8, rtol=5e-3), (q2b, q2_ref)

    # 4) moderate batch, f32, default tile: exercises the VMEM-budgeted tile
    #    and the >= 2-step split for v7x megacore.
    batch3 = 4096
    obs3 = jax.random.normal(k_obs3, (batch3, obs_dim), dtype=jnp.float32)
    act3 = jax.random.normal(k_act3, (batch3, act_dim), dtype=jnp.float32)
    q3 = jax.block_until_ready(mlp_qfunction(obs3, act3, weights, biases, obs_dim))
    q3_ref = reference_qfunction(obs3, act3, weights, biases)
    assert q3.shape == (batch3,), q3.shape
    assert jnp.allclose(q3, q3_ref, atol=1e-8, rtol=5e-3), (q3, q3_ref)

    # 5) opt-in (lossy) bf16 streaming: inputs + hidden weights bf16, f32 accum.
    q4 = jax.block_until_ready(
        mlp_qfunction(obs2, act2, weights, biases, obs_dim,
                      input_dtype=jnp.bfloat16))
    q4_ref = reference_qfunction(obs2, act2, weights, biases,
                                 cast_dtype=jnp.bfloat16)
    assert q4.shape == (batch2,), q4.shape
    assert jnp.allclose(q4, q4_ref, atol=1e-8, rtol=2e-2), (q4, q4_ref)

    print("KERNEL_OK")
</pallas_src>

<mosaic_0001>
module attributes {stable_mosaic.version = 11 : i64} {
  func.func @kernel(%arg0: i32, %arg1: memref<8x16xf32, #tpu.memory_space<vmem>>, %arg2: memref<8x8xf32, #tpu.memory_space<vmem>>, %arg3: memref<16x40xf32, #tpu.memory_space<vmem>>, %arg4: memref<8x40xf32, #tpu.memory_space<vmem>>, %arg5: memref<1x40xf32, #tpu.memory_space<vmem>>, %arg6: memref<40x32xf32, #tpu.memory_space<vmem>>, %arg7: memref<1x32xf32, #tpu.memory_space<vmem>>, %arg8: memref<1x32xf32, #tpu.memory_space<vmem>>, %arg9: memref<1x1xf32, #tpu.memory_space<vmem>>, %arg10: memref<8x1xf32, #tpu.memory_space<vmem>>) attributes {dimension_semantics = [#tpu.dimension_semantics<parallel>], iteration_bounds = array<i64: 1>, scalar_prefetch = 0 : i64, scratch_operands = 0 : i64, tpu.core_type = #tpu.core_type<tc>, window_params = [{transform_indices = @transform_0, window_bounds = array<i64: 8, 16>}, {transform_indices = @transform_1, window_bounds = array<i64: 8, 8>}, {pipeline_mode = #tpu.pipeline_mode<synchronous>, transform_indices = @transform_2, window_bounds = array<i64: 16, 40>}, {pipeline_mode = #tpu.pipeline_mode<synchronous>, transform_indices = @transform_3, window_bounds = array<i64: 8, 40>}, {pipeline_mode = #tpu.pipeline_mode<synchronous>, transform_indices = @transform_4, window_bounds = array<i64: 1, 40>}, {pipeline_mode = #tpu.pipeline_mode<synchronous>, transform_indices = @transform_5, window_bounds = array<i64: 40, 32>}, {pipeline_mode = #tpu.pipeline_mode<synchronous>, transform_indices = @transform_6, window_bounds = array<i64: 1, 32>}, {pipeline_mode = #tpu.pipeline_mode<synchronous>, transform_indices = @transform_7, window_bounds = array<i64: 1, 32>}, {pipeline_mode = #tpu.pipeline_mode<synchronous>, transform_indices = @transform_8, window_bounds = array<i64: 1, 1>}, {transform_indices = @transform_9, window_bounds = array<i64: 8, 1>}]} {
    %c0 = arith.constant 0 : index
    %c0_0 = arith.constant 0 : index
    %0 = vector.load %arg3[%c0, %c0_0] : memref<16x40xf32, #tpu.memory_space<vmem>>, vector<16x40xf32>
    %c0_1 = arith.constant 0 : index
    %c0_2 = arith.constant 0 : index
    %1 = vector.load %arg4[%c0_1, %c0_2] : memref<8x40xf32, #tpu.memory_space<vmem>>, vector<8x40xf32>
    %c0_3 = arith.constant 0 : index
    %c0_4 = arith.constant 0 : index
    %2 = vector.load %arg5[%c0_3, %c0_4] : memref<1x40xf32, #tpu.memory_space<vmem>>, vector<1x40xf32>
    %c0_5 = arith.constant 0 : index
    %c0_6 = arith.constant 0 : index
    %3 = vector.load %arg1[%c0_5, %c0_6] : memref<8x16xf32, #tpu.memory_space<vmem>>, vector<8x16xf32>
    %cst = arith.constant dense<0.000000e+00> : vector<8x40xf32>
    %4 = tpu.matmul %3, %0, %cst {dimension_numbers = #tpu.dot_dimension_numbers<[1], [0], [0], [1], [0, 0, 1, 1], [], []>} : vector<8x16xf32>, vector<16x40xf32>, vector<8x40xf32> -> vector<8x40xf32>
    %c0_7 = arith.constant 0 : index
    %c0_8 = arith.constant 0 : index
    %5 = vector.load %arg2[%c0_7, %c0_8] : memref<8x8xf32, #tpu.memory_space<vmem>>, vector<8x8xf32>
    %cst_9 = arith.constant dense<0.000000e+00> : vector<8x40xf32>
    %6 = tpu.matmul %5, %1, %cst_9 {dimension_numbers = #tpu.dot_dimension_numbers<[1], [0], [0], [1], [0, 0, 1, 1], [], []>} : vector<8x8xf32>, vector<8x40xf32>, vector<8x40xf32> -> vector<8x40xf32>
    %7 = arith.addf %4, %6 : vector<8x40xf32>
    %8 = vector.broadcast %2 : vector<1x40xf32> to vector<8x40xf32>
    %9 = arith.addf %7, %8 : vector<8x40xf32>
    %cst_10 = arith.constant 0.000000e+00 : f32
    %10 = vector.broadcast %cst_10 : f32 to vector<8x40xf32>
    %11 = arith.maximumf %9, %10 : vector<8x40xf32>
    %c0_11 = arith.constant 0 : index
    %c0_12 = arith.constant 0 : index
    %12 = vector.load %arg6[%c0_11, %c0_12] : memref<40x32xf32, #tpu.memory_space<vmem>>, vector<40x32xf32>
    %c0_13 = arith.constant 0 : index
    %c0_14 = arith.constant 0 : index
    %13 = vector.load %arg7[%c0_13, %c0_14] : memref<1x32xf32, #tpu.memory_space<vmem>>, vector<1x32xf32>
    %cst_15 = arith.constant dense<0.000000e+00> : vector<8x32xf32>
    %14 = tpu.matmul %11, %12, %cst_15 {dimension_numbers = #tpu.dot_dimension_numbers<[1], [0], [0], [1], [0, 0, 1, 1], [], []>} : vector<8x40xf32>, vector<40x32xf32>, vector<8x32xf32> -> vector<8x32xf32>
    %15 = vector.broadcast %13 : vector<1x32xf32> to vector<8x32xf32>
    %16 = arith.addf %14, %15 : vector<8x32xf32>
    %cst_16 = arith.constant 0.000000e+00 : f32
    %17 = vector.broadcast %cst_16 : f32 to vector<8x32xf32>
    %18 = arith.maximumf %16, %17 : vector<8x32xf32>
    %c0_17 = arith.constant 0 : index
    %c0_18 = arith.constant 0 : index
    %19 = vector.load %arg8[%c0_17, %c0_18] : memref<1x32xf32, #tpu.memory_space<vmem>>, vector<1x32xf32>
    %c0_19 = arith.constant 0 : index
    %c0_20 = arith.constant 0 : index
    %20 = vector.load %arg9[%c0_19, %c0_20] : memref<1x1xf32, #tpu.memory_space<vmem>>, vector<1x1xf32>
    %21 = vector.broadcast %19 : vector<1x32xf32> to vector<8x32xf32>
    %22 = arith.mulf %18, %21 : vector<8x32xf32>
    %cst_21 = arith.constant dense<0.000000e+00> : vector<8xf32>
    %23 = vector.multi_reduction <add>, %22, %cst_21 [1] : vector<8x32xf32> to vector<8xf32>
    %24 = vector.shape_cast %23 : vector<8xf32> to vector<8x1xf32>
    %25 = vector.broadcast %20 : vector<1x1xf32> to vector<8x1xf32>
    %26 = arith.addf %24, %25 : vector<8x1xf32>
    %c0_22 = arith.constant 0 : index
    %c0_23 = arith.constant 0 : index
    %27 = vector.load %arg10[%c0_22, %c0_23] : memref<8x1xf32, #tpu.memory_space<vmem>>, vector<8x1xf32>
    tpu.vector_store %arg10[%c0_22, %c0_23], %26 {strides = array<i32>} : memref<8x1xf32, #tpu.memory_space<vmem>>, vector<8x1xf32>,
    return
  }
  func.func @transform_0(%arg0: i32) -> (i32, i32) {
    %c0_i32 = arith.constant 0 : i32
    %c0_i32_0 = arith.constant 0 : i32
    return %arg0, %c0_i32 : i32, i32
  }
  func.func @transform_1(%arg0: i32) -> (i32, i32) {
    %c0_i32 = arith.constant 0 : i32
    %c0_i32_0 = arith.constant 0 : i32
    return %arg0, %c0_i32 : i32, i32
  }
  func.func @transform_2(%arg0: i32) -> (i32, i32) {
    %c0_i32 = arith.constant 0 : i32
    %c0_i32_0 = arith.constant 0 : i32
    %c0_i32_1 = arith.constant 0 : i32
    return %c0_i32, %c0_i32_0 : i32, i32
  }
  func.func @transform_3(%arg0: i32) -> (i32, i32) {
    %c0_i32 = arith.constant 0 : i32
    %c0_i32_0 = arith.constant 0 : i32
    %c0_i32_1 = arith.constant 0 : i32
    return %c0_i32, %c0_i32_0 : i32, i32
  }
  func.func @transform_4(%arg0: i32) -> (i32, i32) {
    %c0_i32 = arith.constant 0 : i32
    %c0_i32_0 = arith.constant 0 : i32
    %c0_i32_1 = arith.constant 0 : i32
    return %c0_i32, %c0_i32_0 : i32, i32
  }
  func.func @transform_5(%arg0: i32) -> (i32, i32) {
    %c0_i32 = arith.constant 0 : i32
    %c0_i32_0 = arith.constant 0 : i32
    %c0_i32_1 = arith.constant 0 : i32
    return %c0_i32, %c0_i32_0 : i32, i32
  }
  func.func @transform_6(%arg0: i32) -> (i32, i32) {
    %c0_i32 = arith.constant 0 : i32
    %c0_i32_0 = arith.constant 0 : i32
    %c0_i32_1 = arith.constant 0 : i32
    return %c0_i32, %c0_i32_0 : i32, i32
  }
  func.func @transform_7(%arg0: i32) -> (i32, i32) {
    %c0_i32 = arith.constant 0 : i32
    %c0_i32_0 = arith.constant 0 : i32
    %c0_i32_1 = arith.constant 0 : i32
    return %c0_i32, %c0_i32_0 : i32, i32
  }
  func.func @transform_8(%arg0: i32) -> (i32, i32) {
    %c0_i32 = arith.constant 0 : i32
    %c0_i32_0 = arith.constant 0 : i32
    %c0_i32_1 = arith.constant 0 : i32
    return %c0_i32, %c0_i32_0 : i32, i32
  }
  func.func @transform_9(%arg0: i32) -> (i32, i32) {
    %c0_i32 = arith.constant 0 : i32
    %c0_i32_0 = arith.constant 0 : i32
    return %arg0, %c0_i32 : i32, i32
  }
}

</mosaic_0001>

<bundles_post_ra>
// kernel: tpu_custom_call.1
= control target key start
LH: loop header
LB: loop body
LE: loop exit
PB: predicated region body
PF: predicated region fallthrough
CT: control target
= control target key end

     0   :  { %vm40_vm0 = vcmask 64512   ;;  %vm64_vm1 = vcmask 130048   ;;  %vm102_vm2 = vcmask 326656   ;;  %vm133_vm3 = vcmask 261120   ;;  %s249_s2 = inlined_call_operand.vmem [shape: f32[16,40], index: 2, kind: input, shape index: {}]   ;;  %s250_s3 = inlined_call_operand.vmem [shape: f32[8,40], index: 3, kind: input, shape index: {}]   ;;  %s251_s1 = inlined_call_operand.vmem [shape: f32[8,8], index: 1, kind: input, shape index: {}]   ;;  %s252_s0 = inlined_call_operand.vmem [shape: f32[8,16], index: 0, kind: input, shape index: {}]   ;;  %s253_s5 = inlined_call_operand.vmem [shape: f32[40,32], index: 5, kind: input, shape index: {}]   ;;  %s254_s4 = inlined_call_operand.vmem [shape: f32[1,40], index: 4, kind: input, shape index: {}]   ;;  %s255_s6 = inlined_call_operand.vmem [shape: f32[1,32], index: 6, kind: input, shape index: {}]   ;;  %s256_s7 = inlined_call_operand.vmem [shape: f32[1,32], index: 7, kind: input, shape index: {}]   ;;  %s257_s8 = inlined_call_operand.<no memory space> [shape: f32[1,1], index: 8, kind: input, shape index: {}]   ;;  %s258_s9 = inlined_call_operand.vmem [shape: f32[8,1], index: 9, kind: output, shape index: {}]  }
   0x1   :  { %v35_v0 = vld [vmem:[%s249_s2 + $0x8] sm:$0xff]  ;;  %v36_v1 = vld [vmem:[%s250_s3] sm:$0xff]  ;;  %v96_v6 = vld [vmem:[%s253_s5 + $0x18] sm:$0xff]  ;;  %v14_v16 = vstv %s257_s8  ;;  %vm141_vm4 = vcmask 7168  }
   0x2   :  { %v34_v2 = vld [vmem:[%s249_s2] sm:$0xff]  ;;  %82 = vmatpush.msra.mxu1 %v35_v0  ;;  %59 = vmatpush.msra.mxu0 %v36_v1  ;;  %v95_v7 = vld [vmem:[%s253_s5 + $0x10] sm:$0xff]  ;;  %v94_v8 = vld [vmem:[%s253_s5 + $0x8] sm:$0xff]  ;;  %15 = vst [vmem:[#allocation2] sm:$0x1] %v14_v16 }
   0x3   :  { %v39_v3 = vld [vmem:[%s251_s1] sm:$0xff] }
   0x4   :  { %v38_v4 = vld [vmem:[%s252_s0] sm:$0xff]  ;;  %147 = vmatmul.msk.f32.vlgmr.msra.gmra.mxu0 %vm40_vm0, %v39_v3  ;;  %83 = vmatpush.msra.mxu1 %v34_v2 }
   0x5   :  { %v97_v5 = vld [vmem:[%s253_s5 + $0x20] sm:$0xff]  ;;  %148 = vmatmul.msk.f32.vlgmr.msra.gmra.mxu1 %vm64_vm1, %v38_v4 }
   0x6   :  { %117 = vmatpush.msra.mxu2 %v97_v5  ;;  %v93_v9 = vld [vmem:[%s253_s5] sm:$0xff] }
   0x7   :  { %v150_v11 = vld [vmem:[%s254_s4] ss:$0 sm:$0xff] }
   0x8   :  { %118 = vmatpush.msra.mxu2 %v96_v6  ;;  %v151_v17 = vld [vmem:[%s255_s6] ss:$0 sm:$0xff] }
   0x9   :  { %v152_v20 = vld [vmem:[%s256_s7] ss:$0 sm:$0xff] }
   0xa   :  { %119 = vmatpush.msra.mxu2 %v95_v7  ;;  %v153_v24 = vld [vmem:[#allocation2] ss:$0 sm:$0xff] }
   0xc   :  { %120 = vmatpush.msra.mxu2 %v94_v8 }
   0xe   :  { %121 = vmatpush.msra.mxu2 %v93_v9 }
  0x81   :  { %v61_v10 = vpop.f32.mrf.mxu0 }
  0x82   :  { %v85_v12 = vpop.f32.mrf.mxu1 }
  0x83   :  { %v86_v13 = vadd.f32 %v85_v12, %v61_v10 }
  0x85   :  { %v91_v14 = vadd.f32 %v150_v11, %v86_v13 }
  0x87   :  { %v92_v15 = vmax.f32 %v91_v14, 0.0 }
  0x89   :  { %149 = vmatmul.msk.f32.vlgmr.msra.gmra.mxu2 %vm102_vm2, %v92_v15 }
 0x10c   :  { %v123_v18 = vpop.f32.mrf.mxu2 }
 0x10d   :  { %v124_v19 = vadd.f32 %v151_v17, %v123_v18 }
 0x10f   :  { %v126_v21 = vmax.f32 %v124_v19, 0.0 }
 0x111   :  { %v132_v22 = vmul.f32 %v152_v20, %v126_v21 }
 0x113   :  { %v134_v23 = vsel %vm133_vm3, %v132_v22, 0.0 }
 0x114   :  { %135 = vadd.xlane.f32.xlu0 %v134_v23 }
 0x187   :  { %v136_v25 = vpop.xlane.xlu0 %135 }
 0x188   :  { %v140_v26 = vadd.f32 %v153_v24, %v136_v25 }
 0x18a   :  { %142 = vst.msk [vmem:[%s258_s9] sm:$0xff] %vm141_vm4, %v140_v26 }

</bundles_post_ra>
